<compile_context>
chip_gen: v7x
topology: tpu7x:2x2x1
jax: 0.10.0
libtpu: 0.0.40
codegen_flags: <defaults>
</compile_context>

<pallas_src>
import functools

import numpy as np
import jax
import jax.numpy as jnp
from jax.experimental import pallas as pl
from jax.experimental.pallas import tpu as pltpu

_EPS = 1e-12  # matches torch.nn.functional.normalize default eps


def _readout_kernel(x_ref, rl_ref, mu_ref, wbig_ref, bbig_ref, wf_ref, bf_ref,
                    pair_ref, w_ref, ph_ref, *, sqrt_pt):
    # ---- beamformer branch: one batched matmul over flattened [uc ; uk] rows ----
    w = jnp.dot(x_ref[...], wbig_ref[...],
                preferred_element_type=jnp.float32) + bbig_ref[...]     # (TB, (K+1)*2M)
    # Per-batch L2 norm over the flattened (K+1)*2M vector (== F.normalize(dim=1)).
    sq = jnp.sum(w * w, axis=1, keepdims=True)                          # (TB, 1)
    inv_norm = jax.lax.rsqrt(jnp.maximum(sq, _EPS * _EPS))              # == 1/max(||w||, eps)
    scale = sqrt_pt * jnp.sqrt(mu_ref[...]) * inv_norm                  # (TB, 1)
    w_ref[...] = w * scale                                              # single full-block store

    # ---- phase branch: batched matmul; columns pre-interleaved (re0, im0, ...) ----
    r = jnp.dot(rl_ref[...], wf_ref[...],
                preferred_element_type=jnp.float32) + bf_ref[...]       # (TB*L, 2N)
    # (r*r) @ pair broadcasts re^2 + im^2 to both columns of each (re, im) pair.
    pair_sq = jnp.dot(r * r, pair_ref[...], preferred_element_type=jnp.float32)
    inv_p = jax.lax.rsqrt(jnp.maximum(pair_sq, _EPS * _EPS))
    ph_ref[...] = r * inv_p                                             # single lane-dense store


def _pick_batch_tile(B, per_batch_bytes, budget_bytes=4 << 20):
    """Largest batch tile that divides B, is sublane-friendly, and fits a VMEM budget."""
    cands = [tb for tb in range(1, B + 1)
             if B % tb == 0 and (tb == B or tb % 8 == 0)]
    fitting = [tb for tb in cands if tb * per_batch_bytes <= budget_bytes]
    return max(fitting) if fitting else min(cands)


def readout_forward(uk, uc, rl, mu, params, Pt):
    """Pallas-backed forward pass. Returns (W, phase) matching the PyTorch module."""
    wfu, bfu, wfc, bfc, wf, bf = params
    B, K, D = uk.shape
    L = rl.shape[1]
    M2 = wfu.shape[1]          # 2*M
    N2 = wf.shape[1]           # 2*N
    N = N2 // 2
    KD = (K + 1) * D
    KM = (K + 1) * M2
    f32 = jnp.float32

    # ---- wrapper-side layout / parameter packing (traced once; layout glue only) ----
    # Stack [uc ; uk] per batch and flatten -> one row per batch for the W branch.
    x2 = jnp.concatenate([uc[:, None, :], uk], axis=1).reshape(B, KD).astype(f32)
    rl2 = rl.reshape(B * L, D).astype(f32)
    mu0 = mu[:, :1].astype(f32)                                          # (B, 1)

    # Block-diagonal weight selects fc for row 0 and fu for rows 1..K of each batch.
    wbig = jax.scipy.linalg.block_diag(wfc.astype(f32), *([wfu.astype(f32)] * K))  # (KD, KM)
    bbig = jnp.concatenate([bfc.astype(f32)] + [bfu.astype(f32)] * K, axis=1)      # (1, KM)

    # Interleave the phase projection columns to (re0, im0, re1, im1, ...) so the
    # kernel output reshapes to (B, L, N, 2) for free.
    perm = np.arange(N2).reshape(2, N).T.reshape(-1)
    wf_i = wf[:, perm].astype(f32)
    bf_i = bf[:, perm].astype(f32)
    # Constant pair-sum matrix: pair[i, j] = 1 iff columns i, j belong to the same (re, im) pair.
    idx = np.arange(N2)
    pair = jnp.asarray((idx[:, None] // 2) == (idx[None, :] // 2), dtype=f32)      # (2N, 2N)

    # ---- batch tiling (TB == B for small problems -> a single grid step) ----
    per_batch_bytes = 4 * (KD + L * D + 1 + KM + L * N2) * 2   # double-buffered in+out blocks
    TB = _pick_batch_tile(B, per_batch_bytes)
    grid = (B // TB,)

    kernel = functools.partial(_readout_kernel, sqrt_pt=float(np.sqrt(Pt)))

    wflat, ph = pl.pallas_call(
        kernel,
        grid=grid,
        in_specs=[
            pl.BlockSpec((TB, KD), lambda i: (i, 0)),        # x2 = flattened [uc ; uk]
            pl.BlockSpec((TB * L, D), lambda i: (i, 0)),     # rl (flattened over batch)
            pl.BlockSpec((TB, 1), lambda i: (i, 0)),         # mu[:, 0]
            pl.BlockSpec((KD, KM), lambda i: (0, 0)),        # block-diag weight (resident)
            pl.BlockSpec((1, KM), lambda i: (0, 0)),         # packed bias
            pl.BlockSpec((D, N2), lambda i: (0, 0)),         # f weight (interleaved cols)
            pl.BlockSpec((1, N2), lambda i: (0, 0)),         # f bias (interleaved cols)
            pl.BlockSpec((N2, N2), lambda i: (0, 0)),        # pair-sum matrix
        ],
        out_specs=[
            pl.BlockSpec((TB, KM), lambda i: (i, 0)),        # W, flattened per batch
            pl.BlockSpec((TB * L, N2), lambda i: (i, 0)),    # phase, interleaved re/im
        ],
        out_shape=[
            jax.ShapeDtypeStruct((B, KM), f32),
            jax.ShapeDtypeStruct((B * L, N2), f32),
        ],
        compiler_params=pltpu.CompilerParams(dimension_semantics=("parallel",)),
    )(x2, rl2, mu0, wbig, bbig, wf_i, bf_i, pair)

    W = wflat.reshape(B, K + 1, M2)       # free view
    phase = ph.reshape(B, L, N, 2)        # free view (columns were pre-interleaved)
    return W, phase


def readout_reference(uk, uc, rl, mu, params, Pt):
    """Pure-JAX reference reproducing the PyTorch forward semantics."""
    wfu, bfu, wfc, bfc, wf, bf = params
    B, K, D = uk.shape
    N = wf.shape[1] // 2

    Wu = uk @ wfu + bfu                      # (B, K, 2M)
    Wc = uc @ wfc + bfc                      # (B, 2M)
    W = jnp.concatenate([Wc[:, None, :], Wu], axis=1)
    Wflat = W.reshape(B, -1)
    norm = jnp.maximum(jnp.linalg.norm(Wflat, axis=1, keepdims=True), _EPS)
    Wflat = Wflat / norm * np.sqrt(Pt) * jnp.sqrt(mu[:, 0])[:, None]
    W = Wflat.reshape(B, K + 1, -1)

    Rl = rl @ wf + bf                        # (B, L, 2N)
    re = Rl[..., :N][..., None]
    im = Rl[..., N:][..., None]
    phase = jnp.concatenate([re, im], axis=3)
    pnorm = jnp.maximum(jnp.linalg.norm(phase, axis=3, keepdims=True), _EPS)
    return W, phase / pnorm


def init_params(key, in_dim, M, N):
    """Deterministic synthetic parameters (Linear weights stored transposed: (in, out))."""
    ks = jax.random.split(key, 6)
    s = 1.0 / np.sqrt(in_dim)
    wfu = jax.random.uniform(ks[0], (in_dim, 2 * M), jnp.float32, -s, s)
    bfu = jax.random.uniform(ks[1], (1, 2 * M), jnp.float32, -s, s)
    wfc = jax.random.uniform(ks[2], (in_dim, 2 * M), jnp.float32, -s, s)
    bfc = jax.random.uniform(ks[3], (1, 2 * M), jnp.float32, -s, s)
    wf = jax.random.uniform(ks[4], (in_dim, 2 * N), jnp.float32, -s, s)
    bf = jax.random.uniform(ks[5], (1, 2 * N), jnp.float32, -s, s)
    return (wfu, bfu, wfc, bfc, wf, bf)


if __name__ == "__main__":
    # Small, module-consistent shapes.
    M, N, L, Pt, in_dim = 4, 4, 8, 10.0, 32
    B, K = 2, 3

    key = jax.random.PRNGKey(0)
    kp, k1, k2, k3, k4 = jax.random.split(key, 5)

    params = init_params(kp, in_dim, M, N)
    uk = jax.random.normal(k1, (B, K, in_dim), jnp.float32)
    uc = jax.random.normal(k2, (B, in_dim), jnp.float32)
    rl = jax.random.normal(k3, (B, L, in_dim), jnp.float32)
    mu = jax.random.uniform(k4, (B, 2), jnp.float32, 0.5, 2.0)  # positive (sqrt is taken)

    W, phase = readout_forward(uk, uc, rl, mu, params, Pt)
    jax.block_until_ready((W, phase))

    W_ref, phase_ref = readout_reference(uk, uc, rl, mu, params, Pt)
    np.testing.assert_allclose(np.asarray(W), np.asarray(W_ref), rtol=1e-5, atol=1e-5)
    np.testing.assert_allclose(np.asarray(phase), np.asarray(phase_ref), rtol=1e-5, atol=1e-5)

    print("KERNEL_OK")
</pallas_src>

<mosaic_0001>
module attributes {stable_mosaic.version = 11 : i64} {
  func.func @_readout_kernel(%arg0: i32, %arg1: memref<2x128xf32, #tpu.memory_space<vmem>>, %arg2: memref<16x32xf32, #tpu.memory_space<vmem>>, %arg3: memref<2x1xf32, #tpu.memory_space<vmem>>, %arg4: memref<128x32xf32, #tpu.memory_space<vmem>>, %arg5: memref<1x32xf32, #tpu.memory_space<vmem>>, %arg6: memref<32x8xf32, #tpu.memory_space<vmem>>, %arg7: memref<1x8xf32, #tpu.memory_space<vmem>>, %arg8: memref<8x8xf32, #tpu.memory_space<vmem>>, %arg9: memref<2x32xf32, #tpu.memory_space<vmem>>, %arg10: memref<16x8xf32, #tpu.memory_space<vmem>>) attributes {dimension_semantics = [#tpu.dimension_semantics<parallel>], iteration_bounds = array<i64: 1>, scalar_prefetch = 0 : i64, scratch_operands = 0 : i64, tpu.core_type = #tpu.core_type<tc>, window_params = [{transform_indices = @transform_0, window_bounds = array<i64: 2, 128>}, {transform_indices = @transform_1, window_bounds = array<i64: 16, 32>}, {transform_indices = @transform_2, window_bounds = array<i64: 2, 1>}, {pipeline_mode = #tpu.pipeline_mode<synchronous>, transform_indices = @transform_3, window_bounds = array<i64: 128, 32>}, {pipeline_mode = #tpu.pipeline_mode<synchronous>, transform_indices = @transform_4, window_bounds = array<i64: 1, 32>}, {pipeline_mode = #tpu.pipeline_mode<synchronous>, transform_indices = @transform_5, window_bounds = array<i64: 32, 8>}, {pipeline_mode = #tpu.pipeline_mode<synchronous>, transform_indices = @transform_6, window_bounds = array<i64: 1, 8>}, {pipeline_mode = #tpu.pipeline_mode<synchronous>, transform_indices = @transform_7, window_bounds = array<i64: 8, 8>}, {transform_indices = @transform_8, window_bounds = array<i64: 2, 32>}, {transform_indices = @transform_9, window_bounds = array<i64: 16, 8>}]} {
    %c0 = arith.constant 0 : index
    %c0_0 = arith.constant 0 : index
    %0 = vector.load %arg1[%c0, %c0_0] : memref<2x128xf32, #tpu.memory_space<vmem>>, vector<2x128xf32>
    %c0_1 = arith.constant 0 : index
    %c0_2 = arith.constant 0 : index
    %1 = vector.load %arg4[%c0_1, %c0_2] : memref<128x32xf32, #tpu.memory_space<vmem>>, vector<128x32xf32>
    %cst = arith.constant dense<0.000000e+00> : vector<2x32xf32>
    %2 = tpu.matmul %0, %1, %cst {dimension_numbers = #tpu.dot_dimension_numbers<[1], [0], [0], [1], [0, 0, 1, 1], [], []>} : vector<2x128xf32>, vector<128x32xf32>, vector<2x32xf32> -> vector<2x32xf32>
    %c0_3 = arith.constant 0 : index
    %c0_4 = arith.constant 0 : index
    %3 = vector.load %arg5[%c0_3, %c0_4] : memref<1x32xf32, #tpu.memory_space<vmem>>, vector<1x32xf32>
    %4 = vector.broadcast %3 : vector<1x32xf32> to vector<2x32xf32>
    %5 = arith.addf %2, %4 : vector<2x32xf32>
    %6 = arith.mulf %5, %5 : vector<2x32xf32>
    %cst_5 = arith.constant dense<0.000000e+00> : vector<2xf32>
    %7 = vector.multi_reduction <add>, %6, %cst_5 [1] : vector<2x32xf32> to vector<2xf32>
    %8 = vector.shape_cast %7 : vector<2xf32> to vector<2x1xf32>
    %cst_6 = arith.constant 1.000000e-24 : f32
    %9 = vector.broadcast %cst_6 : f32 to vector<2x1xf32>
    %10 = arith.maximumf %8, %9 : vector<2x1xf32>
    %11 = math.rsqrt %10 : vector<2x1xf32>
    %c0_7 = arith.constant 0 : index
    %c0_8 = arith.constant 0 : index
    %12 = vector.load %arg3[%c0_7, %c0_8] : memref<2x1xf32, #tpu.memory_space<vmem>>, vector<2x1xf32>
    %13 = math.sqrt %12 : vector<2x1xf32>
    %cst_9 = arith.constant 3.1622777 : f32
    %14 = vector.broadcast %cst_9 : f32 to vector<2x1xf32>
    %15 = arith.mulf %14, %13 : vector<2x1xf32>
    %16 = arith.mulf %15, %11 : vector<2x1xf32>
    %17 = vector.broadcast %16 : vector<2x1xf32> to vector<2x32xf32>
    %18 = arith.mulf %5, %17 : vector<2x32xf32>
    %c0_10 = arith.constant 0 : index
    %c0_11 = arith.constant 0 : index
    %19 = vector.load %arg9[%c0_10, %c0_11] : memref<2x32xf32, #tpu.memory_space<vmem>>, vector<2x32xf32>
    tpu.vector_store %arg9[%c0_10, %c0_11], %18 {strides = array<i32>} : memref<2x32xf32, #tpu.memory_space<vmem>>, vector<2x32xf32>,
    %c0_12 = arith.constant 0 : index
    %c0_13 = arith.constant 0 : index
    %20 = vector.load %arg2[%c0_12, %c0_13] : memref<16x32xf32, #tpu.memory_space<vmem>>, vector<16x32xf32>
    %c0_14 = arith.constant 0 : index
    %c0_15 = arith.constant 0 : index
    %21 = vector.load %arg6[%c0_14, %c0_15] : memref<32x8xf32, #tpu.memory_space<vmem>>, vector<32x8xf32>
    %cst_16 = arith.constant dense<0.000000e+00> : vector<16x8xf32>
    %22 = tpu.matmul %20, %21, %cst_16 {dimension_numbers = #tpu.dot_dimension_numbers<[1], [0], [0], [1], [0, 0, 1, 1], [], []>} : vector<16x32xf32>, vector<32x8xf32>, vector<16x8xf32> -> vector<16x8xf32>
    %c0_17 = arith.constant 0 : index
    %c0_18 = arith.constant 0 : index
    %23 = vector.load %arg7[%c0_17, %c0_18] : memref<1x8xf32, #tpu.memory_space<vmem>>, vector<1x8xf32>
    %24 = vector.broadcast %23 : vector<1x8xf32> to vector<16x8xf32>
    %25 = arith.addf %22, %24 : vector<16x8xf32>
    %26 = arith.mulf %25, %25 : vector<16x8xf32>
    %c0_19 = arith.constant 0 : index
    %c0_20 = arith.constant 0 : index
    %27 = vector.load %arg8[%c0_19, %c0_20] : memref<8x8xf32, #tpu.memory_space<vmem>>, vector<8x8xf32>
    %cst_21 = arith.constant dense<0.000000e+00> : vector<16x8xf32>
    %28 = tpu.matmul %26, %27, %cst_21 {dimension_numbers = #tpu.dot_dimension_numbers<[1], [0], [0], [1], [0, 0, 1, 1], [], []>} : vector<16x8xf32>, vector<8x8xf32>, vector<16x8xf32> -> vector<16x8xf32>
    %cst_22 = arith.constant 1.000000e-24 : f32
    %29 = vector.broadcast %cst_22 : f32 to vector<16x8xf32>
    %30 = arith.maximumf %28, %29 : vector<16x8xf32>
    %31 = math.rsqrt %30 : vector<16x8xf32>
    %32 = arith.mulf %25, %31 : vector<16x8xf32>
    %c0_23 = arith.constant 0 : index
    %c0_24 = arith.constant 0 : index
    %33 = vector.load %arg10[%c0_23, %c0_24] : memref<16x8xf32, #tpu.memory_space<vmem>>, vector<16x8xf32>
    tpu.vector_store %arg10[%c0_23, %c0_24], %32 {strides = array<i32>} : memref<16x8xf32, #tpu.memory_space<vmem>>, vector<16x8xf32>,
    return
  }
  func.func @transform_0(%arg0: i32) -> (i32, i32) {
    %c0_i32 = arith.constant 0 : i32
    %c0_i32_0 = arith.constant 0 : i32
    return %arg0, %c0_i32 : i32, i32
  }
  func.func @transform_1(%arg0: i32) -> (i32, i32) {
    %c0_i32 = arith.constant 0 : i32
    %c0_i32_0 = arith.constant 0 : i32
    return %arg0, %c0_i32 : i32, i32
  }
  func.func @transform_2(%arg0: i32) -> (i32, i32) {
    %c0_i32 = arith.constant 0 : i32
    %c0_i32_0 = arith.constant 0 : i32
    return %arg0, %c0_i32 : i32, i32
  }
  func.func @transform_3(%arg0: i32) -> (i32, i32) {
    %c0_i32 = arith.constant 0 : i32
    %c0_i32_0 = arith.constant 0 : i32
    %c0_i32_1 = arith.constant 0 : i32
    return %c0_i32, %c0_i32_0 : i32, i32
  }
  func.func @transform_4(%arg0: i32) -> (i32, i32) {
    %c0_i32 = arith.constant 0 : i32
    %c0_i32_0 = arith.constant 0 : i32
    %c0_i32_1 = arith.constant 0 : i32
    return %c0_i32, %c0_i32_0 : i32, i32
  }
  func.func @transform_5(%arg0: i32) -> (i32, i32) {
    %c0_i32 = arith.constant 0 : i32
    %c0_i32_0 = arith.constant 0 : i32
    %c0_i32_1 = arith.constant 0 : i32
    return %c0_i32, %c0_i32_0 : i32, i32
  }
  func.func @transform_6(%arg0: i32) -> (i32, i32) {
    %c0_i32 = arith.constant 0 : i32
    %c0_i32_0 = arith.constant 0 : i32
    %c0_i32_1 = arith.constant 0 : i32
    return %c0_i32, %c0_i32_0 : i32, i32
  }
  func.func @transform_7(%arg0: i32) -> (i32, i32) {
    %c0_i32 = arith.constant 0 : i32
    %c0_i32_0 = arith.constant 0 : i32
    %c0_i32_1 = arith.constant 0 : i32
    return %c0_i32, %c0_i32_0 : i32, i32
  }
  func.func @transform_8(%arg0: i32) -> (i32, i32) {
    %c0_i32 = arith.constant 0 : i32
    %c0_i32_0 = arith.constant 0 : i32
    return %arg0, %c0_i32 : i32, i32
  }
  func.func @transform_9(%arg0: i32) -> (i32, i32) {
    %c0_i32 = arith.constant 0 : i32
    %c0_i32_0 = arith.constant 0 : i32
    return %arg0, %c0_i32 : i32, i32
  }
}

</mosaic_0001>

<bundles_post_ra>
// kernel: tpu_custom_call.1
= control target key start
LH: loop header
LB: loop body
LE: loop exit
PB: predicated region body
PF: predicated region fallthrough
CT: control target
= control target key end

     0   :  { %vm163_vm0 = vcmask 261120   ;;  %v509_v3 = vmov 0.0|0.0   ;;  %vm510_vm1 = vmmov 0   ;;  %v511_v12 = vmov 0.0   ;;  %s671_s0 = inlined_call_operand.vmem [shape: f32[2,128], index: 0, kind: input, shape index: {}]   ;;  %s672_s1 = inlined_call_operand.vmem [shape: f32[16,32], index: 1, kind: input, shape index: {}]   ;;  %s673_s2 = inlined_call_operand.vmem [shape: f32[2,1], index: 2, kind: input, shape index: {}]   ;;  %s674_s3 = inlined_call_operand.vmem [shape: f32[128,32], index: 3, kind: input, shape index: {}]   ;;  %s675_s4 = inlined_call_operand.vmem [shape: f32[1,32], index: 4, kind: input, shape index: {}]   ;;  %s676_s5 = inlined_call_operand.vmem [shape: f32[32,8], index: 5, kind: input, shape index: {}]   ;;  %s677_s6 = inlined_call_operand.vmem [shape: f32[1,8], index: 6, kind: input, shape index: {}]   ;;  %s678_s7 = inlined_call_operand.vmem [shape: f32[8,8], index: 7, kind: input, shape index: {}]   ;;  %s679_s8 = inlined_call_operand.hbm [shape: f32[2,32], index: 8, kind: output, shape index: {0}]   ;;  %s680_s9 = inlined_call_operand.vmem [shape: f32[16,8], index: 9, kind: output, shape index: {1}]  }
   0x1   :  { %v33_v0 = vld [vmem:[%s674_s3] sm:$0xff]  ;;  %v34_v1 = vld [vmem:[%s674_s3 + $0x8] sm:$0xff]  ;;  %439 = vmatprep.subr.bf16.mxu0 %v509_v3  ;;  %v35_v6 = vld [vmem:[%s674_s3 + $0x10] sm:$0xff]  ;;  %420 = vmatprep.mubr.msk.f32.mxu0 %vm510_vm1, %v511_v12 }
   0x2   :  { %v152_v2 = vld [vmem:[%s676_s5] sm:$0xff]  ;;  %v440_v4 = vpack.c.bf16 %v34_v1, %v33_v0  ;;  %v153_v5 = vld [vmem:[%s676_s5 + $0x8] sm:$0xff]  ;;  %v36_v7 = vld [vmem:[%s674_s3 + $0x18] sm:$0xff] }
   0x3   :  { %v463_v8 = vpack.c.bf16 %v153_v5, %v152_v2  ;;  %v154_v9 = vld [vmem:[%s676_s5 + $0x10] sm:$0xff]  ;;  %v155_v10 = vld [vmem:[%s676_s5 + $0x18] sm:$0xff]  ;;  %v150_v11 = vld [vmem:[%s672_s1] sm:$0xff]  ;;  %v443_v13 = vpack.c.bf16 %v36_v7, %v35_v6 }
   0x4   :  { %441 = vmatpush3.bf16.msra.mxu0 %v440_v4  ;;  %v467_v14 = vpack.c.bf16 %v155_v10, %v154_v9  ;;  %431 = vmatprep.mubr.msk.f32.mxu1 %vm163_vm0, %v150_v11  ;;  %v37_v15 = vld [vmem:[%s674_s3 + $0x20] sm:$0xff]  ;;  %v38_v16 = vld [vmem:[%s674_s3 + $0x28] sm:$0xff] }
   0x5   :  { %464 = vmatprep.subr.bf16.mxu1 %v463_v8  ;;  %442 = vmatprep.subr.bf16.mxu0 %v509_v3  ;;  %v446_v17 = vpack.c.bf16 %v38_v16, %v37_v15 }
   0x6   :  { %466 = vmatpush3.bf16.msra.mxu1 %v463_v8 }
   0x7   :  { %468 = vmatprep.subr.bf16.mxu1 %v467_v14 }
   0x8   :  { %444 = vmatpush3.bf16.msra.mxu0 %v443_v13 }
   0x9   :  { %15 = vsyncpa [#allocation3], 0  ;;  %445 = vmatprep.subr.bf16.mxu0 %v509_v3  ;;  %v39_v18 = vld [vmem:[%s674_s3 + $0x30] sm:$0xff]  ;;  %v40_v19 = vld [vmem:[%s674_s3 + $0x38] sm:$0xff]  ;;  %vm248_vm2 = vcmask 64512   ;;  %vm127_vm3 = vcmask 254976  }
   0xa   :  { %470 = vmatpush3.bf16.msra.mxu1 %v467_v14  ;;  %v151_v20 = vld [vmem:[%s672_s1 + $0x8] sm:$0xff]  ;;  %v449_v21 = vpack.c.bf16 %v40_v19, %v39_v18  ;;  %v41_v22 = vld [vmem:[%s674_s3 + $0x40] sm:$0xff]  ;;  %v43_v25 = vld [vmem:[%s674_s3 + $0x50] sm:$0xff]  ;;  %v512_v49 = vmov 0   ;;  %s513_s16 = smov [#allocation2]  }
   0xb   :  { %v42_v23 = vld [vmem:[%s674_s3 + $0x48] sm:$0xff]  ;;  %v44_v26 = vld [vmem:[%s674_s3 + $0x58] sm:$0xff]  ;;  %v45_v28 = vld [vmem:[%s674_s3 + $0x60] sm:$0xff]  ;;  %476 = vset.pattern.permute.xlu0 %v512_v49  ;;  %s344_s17 = sshll.u32 %s513_s16, 4  ;;  %s345_s17 = int_to_ptr.vmem [resolvable:$true] %s344_s17 }
   0xc   :  { %447 = vmatpush3.bf16.msra.mxu0 %v446_v17  ;;  %v452_v24 = vpack.c.bf16 %v42_v23, %v41_v22  ;;  %v455_v27 = vpack.c.bf16 %v44_v26, %v43_v25  ;;  %v46_v29 = vld [vmem:[%s674_s3 + $0x68] sm:$0xff]  ;;  %v47_v31 = vld [vmem:[%s674_s3 + $0x70] sm:$0xff]  ;;  %v48_v32 = vld [vmem:[%s674_s3 + $0x78] sm:$0xff]  ;;  %s485_s18 = scalar_lea.vmem %s345_s17, 32  ;;  %p490_p1 = scmp.lt.s32.totalorder %s345_s17, %s345_s17 }
   0xd   :  { %432 = vmatmul.mubr.msk.f32.vlgmr.msra.gmra.mrb[0].mxu1 %vm163_vm0, %v151_v20  ;;  %448 = vmatprep.subr.bf16.mxu0 %v509_v3  ;;  %v458_v30 = vpack.c.bf16 %v46_v29, %v45_v28  ;;  %v461_v33 = vpack.c.bf16 %v48_v32, %v47_v31  ;;  %v32_v34 = vld [vmem:[%s671_s0] sm:$0x3]  ;;  %p486_p0 = scmp.ne.s32.totalorder %s345_s17, %s485_s18  ;;  %p491_p2 = scmp.lt.s32.totalorder %s485_s18, %s485_s18 }
   0xe   :  { %v247_v35 = vld [vmem:[%s678_s7] sm:$0xff] }
   0xf   :  { %434 = vmatprep.subr.mxu1 %v247_v35  ;;  %v357_v36 = vld [vmem:[%s677_s6] ss:$0 sm:$0xff]  ;;  %p492_p3 = por %p491_p2, %p490_p1 }
  0x10   :  { %450 = vmatpush3.bf16.msra.mxu0 %v449_v21  ;;  %435 = vmatpush3.msra.mxu1 %v247_v35  ;;  %v356_v43 = vld [vmem:[%s675_s4] ss:$0 sm:$0xff] }
  0x11   :  { %451 = vmatprep.subr.bf16.mxu0 %v509_v3  ;;  %v133_v50 = vld [vmem:[%s673_s2] sm:$0x3]  ;;  %p493_p4 = pnand %p492_p3, %p486_p0 }
  0x12   :  { %477 = vrsqrt.f32 %v133_v50  ;;  %vm136_vm4 = vcmp.eq.f32.partialorder %v133_v50, inf  ;;  %v139_v55 = vand.u32 2147483648, %v133_v50  ;;  %vm138_vm5 = vcmp.eq.f32.partialorder %v133_v50, 0.0 }
  0x14   :  { %453 = vmatpush3.bf16.msra.mxu0 %v452_v24 }
  0x15   :  { %454 = vmatprep.subr.bf16.mxu0 %v509_v3 }
  0x18   :  { %456 = vmatpush3.bf16.msra.mxu0 %v455_v27 }
  0x19   :  { %457 = vmatprep.subr.bf16.mxu0 %v509_v3 }
  0x1c   :  { %459 = vmatpush3.bf16.msra.mxu0 %v458_v30  ;;  %v478_v51 = vpop.eup %477 }
  0x1d   :  { %460 = vmatprep.subr.bf16.mxu0 %v509_v3  ;;  %v135_v53 = vmul.f32 %v478_v51, %v133_v50 }
  0x1f   :  { %v137_v56 = vsel %vm136_vm4, %v133_v50, %v135_v53 }
  0x20   :  { %462 = vmatpush3.bf16.msra.mxu0 %v461_v33  ;;  %v140_v57 = vsel %vm138_vm5, %v139_v55, %v137_v56 }
  0x21   :  { %v141_v58 = vmul.f32 3.1622777, %v140_v57 }
  0x23   :  { %421 = vmatmul.mubr.f32.vlgmr.msra.gmra.mrb[0].mxu0 %v32_v34 }
  0xe0   :  { %v433_v37 = vpop.f32.mrb[0].mxu1 }
  0xe1   :  { %v242_v38 = vadd.f32 %v433_v37, %v357_v36  ;;  %v236_v39 = vpop.f32.mrb[1].mxu1 }
  0xe2   :  { %v237_v40 = vadd.f32 %v357_v36, %v236_v39 }
  0xe3   :  { %v246_v41 = vmul.f32 %v242_v38, %v242_v38 }
  0xe4   :  { %v245_v42 = vmul.f32 %v237_v40, %v237_v40 }
  0xe6   :  { %436 = vmatprep.mubr.msk.f32.mxu1 %vm248_vm2, %v245_v42 }
  0xe7   :  { %437 = vmatmul.mubr.msk.f32.vlgmr.msra.gmra.mrb[2].mxu1 %vm248_vm2, %v246_v41 }
  0xf6   :  { %v122_v44 = vpop.f32.mrb[0].mxu0 }
  0xf7   :  { %v123_v45 = vadd.f32 %v356_v43, %v122_v44  ;;  %v422_v46 = vpop.f32.mrb[1].mxu0 }
  0xf9   :  { %v126_v47 = vmul.f32 %v123_v45, %v123_v45 }
  0xfb   :  { %v128_v48 = vsel %vm127_vm3, %v126_v47, 0.0 }
  0xfc   :  { %129 = vadd.xlane.f32.xlu0 %v128_v48 }
 0x189   :  { %v130_v52 = vpop.xlane.xlu0 %129 }
 0x18a   :  { %v131_v54 = vmax.f32 %v130_v52, 1e-24 }
 0x18c   :  { %479 = vrsqrt.f32 %v131_v54 }
 0x196   :  { %v480_v59 = vpop.eup %479 }
 0x197   :  { %v142_v60 = vmul.f32 %v480_v59, %v141_v58 }
 0x199   :  { %145 = vperm.xlu0 %476, %v142_v60  }
 0x1ba   :  { %v438_v61 = vpop.f32.mrb[2].mxu1 }
 0x1bb   :  { %v331_v62 = vmax.f32 %v438_v61, 1e-24  ;;  %v321_v63 = vpop.f32.mrb[3].mxu1 }
 0x1bc   :  { %v330_v0 = vmax.f32 %v321_v63, 1e-24 }
 0x1bd   :  { %481 = vrsqrt.f32 %v331_v62 }
 0x1be   :  { %483 = vrsqrt.f32 %v330_v0 }
 0x1c7   :  { %v482_v1 = vpop.eup %481 }
 0x1c8   :  { %v484_v2 = vpop.eup %483  ;;  %v335_v3 = vmul.f32 %v482_v1, %v242_v38 }
 0x1c9   :  { %v334_v4 = vmul.f32 %v484_v2, %v237_v40 }
 0x1ca   :  { %337 = vst.msk [vmem:[%s680_s9 + $0x8] sm:$0xff] %vm248_vm2, %v335_v3 }
 0x1cb   :  { %336 = vst.msk [vmem:[%s680_s9] sm:$0xff] %vm248_vm2, %v334_v4 }
 0x218   :  { %v146_v5 = vpop.permute.xlu0 %145 }
 0x219   :  { %v148_v6 = vmul.f32 %v146_v5, %v123_v45 }
 0x21b   :  { %149 = vst.msk [vmem:[#allocation2] sm:$0x3] %vm127_vm3, %v148_v6 }
 0x21c   :  { %496 = shalt.err (!%p493_p4)
}
 0x21d   :  { %s497_s1 = scalar_lea.hbm %s679_s8, 32 }
 0x21e   :  { %p498_p5 = scmp.ne.s32.totalorder %s679_s8, %s497_s1  ;;  %p501_p6 = scmp.lt.u32.totalorder %s497_s1, %s679_s8 }
 0x220   :  { %p503_p7 = pnand %p501_p6, %p498_p5 }
 0x222   :  { %506 = shalt.err (!%p503_p7)
}
 0x223   :  { %347 = dma.vmem_to_hbm [thread:$0]  %s345_s17, 32, %s679_s8, [#allocation3]  }
 0x224   :  { %507 = dma.done.wait [#allocation3], 32  }
 0x225   :  { %508 = vsyncadd [#allocation3], 4294967264 }
 0x226   :  { %355 = vsyncpa [#allocation3], 1 }

</bundles_post_ra>
